<compile_context>
chip_gen: v7x
topology: tpu7x:2x2x1
jax: 0.10.0
libtpu: 0.0.40
codegen_flags: <defaults>
</compile_context>

<pallas_src>
import functools
import math

import jax
import jax.numpy as jnp
from jax.experimental import pallas as pl
from jax.experimental.pallas import tpu as pltpu


# ------------------------------- kernel ------------------------------------

def _projection_kernel(ids_row_ref, ids_col_ref, x_ref, w_ref, b_ref, o_ref, *,
                       max_length, with_cell_shape):
    x = x_ref[0]                                     # [S, H]
    ids_row = ids_row_ref[0]                         # [1, S]  int32
    seq_len = x.shape[0]

    # one_hot_from[m, s] = (token_type_ids[s] == m)   -> [ML, S], bf16 (exact 0/1)
    iota_ms = jax.lax.broadcasted_iota(jnp.int32, (max_length, seq_len), 0)
    one_hot_from = (iota_ms == ids_row).astype(jnp.bfloat16)

    # scatter: cell = one_hot_from @ x   (bf16 MXU operands, f32 accumulation)
    cell = jnp.dot(one_hot_from, x.astype(jnp.bfloat16),
                   preferred_element_type=jnp.float32)        # [ML, H] f32

    # projection_linear + tanh-approx gelu (bf16 MXU operands, f32 accumulate)
    y = jnp.dot(cell.astype(jnp.bfloat16), w_ref[...],
                preferred_element_type=jnp.float32) + b_ref[...]
    c = math.sqrt(2.0 / math.pi)
    y = 0.5 * y * (1.0 + jnp.tanh(c * (y + 0.044715 * (y * y * y))))

    if with_cell_shape:
        o_ref[0] = y.astype(o_ref.dtype)             # [ML, H]
    else:
        # gather: build one_hot_to directly in [S, ML] layout (second VPU
        # compare) so the matmul is natural [M,K]x[K,N] -- no transpose/relayout.
        ids_col = ids_col_ref[0]                     # [S, 1]  int32
        iota_sm = jax.lax.broadcasted_iota(jnp.int32, (seq_len, max_length), 1)
        one_hot_to = (iota_sm == ids_col).astype(jnp.bfloat16)   # [S, ML]
        seq = jnp.dot(one_hot_to, y.astype(jnp.bfloat16),
                      preferred_element_type=jnp.float32)        # [S, H]
        o_ref[0] = seq.astype(o_ref.dtype)


# ------------------------------- wrapper ------------------------------------

def projection_layer(hidden_states, token_type_ids, weight, bias, *,
                     max_length=256, with_cell_shape=False, out_dtype=None):
    """hidden_states: [B, S, H] (f32 or bf16), token_type_ids: [B, S] int,
       weight: [H, H] ("x @ W" layout, i.e. PyTorch weight transposed),
       bias: [H].  Output dtype follows hidden_states unless out_dtype given.

       Note: ids >= max_length map to all-zero one-hot rows/cols (same as
       jax.nn.one_hot); the kernel does not validate ids."""
    B, S, H = hidden_states.shape
    ids_row = token_type_ids.reshape(B, 1, S).astype(jnp.int32)   # for [ML, S] mask
    ids_col = token_type_ids.reshape(B, S, 1).astype(jnp.int32)   # for [S, ML] mask
    w_bf16 = weight.astype(jnp.bfloat16)             # bf16 weight stream for MXU
    bias2d = bias.reshape(1, H).astype(jnp.float32)
    if out_dtype is None:
        out_dtype = hidden_states.dtype

    out_rows = max_length if with_cell_shape else S
    kernel = functools.partial(_projection_kernel,
                               max_length=max_length,
                               with_cell_shape=with_cell_shape)

    return pl.pallas_call(
        kernel,
        grid=(B,),
        in_specs=[
            pl.BlockSpec((1, 1, S), lambda b: (b, 0, 0)),    # ids (row layout)
            pl.BlockSpec((1, S, 1), lambda b: (b, 0, 0)),    # ids (col layout)
            pl.BlockSpec((1, S, H), lambda b: (b, 0, 0)),    # hidden_states
            pl.BlockSpec((H, H), lambda b: (0, 0)),          # weight (bf16)
            pl.BlockSpec((1, H), lambda b: (0, 0)),          # bias (f32)
        ],
        out_specs=pl.BlockSpec((1, out_rows, H), lambda b: (b, 0, 0)),
        out_shape=jax.ShapeDtypeStruct((B, out_rows, H), out_dtype),
        compiler_params=pltpu.CompilerParams(
            dimension_semantics=("parallel",),
            # real sizes (S=256, H=1024, ML=256) exceed v5e's 16-MiB scoped
            # default; 48 MiB also stays inside v7x's 64-MiB physical VMEM.
            vmem_limit_bytes=48 * 1024 * 1024),
    )(ids_row, ids_col, hidden_states, w_bf16, bias2d)
    # TODO(synk): for very large max_length/hidden_size (or B < 2 on v7x), add a
    # second "parallel" grid axis tiling ML (cell path) or the linear's output-H
    # dim, re-deriving the tile budget against v7x's 64-MiB VMEM.
    # TODO(synk): single-buffer the constant weight/bias blocks
    # (pipeline_mode=pl.Buffered(1)) to reclaim ~2 MiB VMEM at H=1024 once that
    # path is exercised in the target JAX version.


# ------------------------------ reference -----------------------------------

def _reference(hidden_states, token_type_ids, weight, bias, *,
               max_length=256, with_cell_shape=False):
    one_hot_to = jax.nn.one_hot(token_type_ids, max_length, dtype=jnp.float32)
    one_hot_from = jnp.swapaxes(one_hot_to, 1, 2)
    cell = jnp.einsum("bms,bsh->bmh", one_hot_from, hidden_states)
    y = cell @ weight + bias
    c = math.sqrt(2.0 / math.pi)
    y = 0.5 * y * (1.0 + jnp.tanh(c * (y + 0.044715 * y ** 3)))
    if with_cell_shape:
        return y
    return jnp.einsum("bsm,bmh->bsh", one_hot_to, y)


# --------------------------------- main --------------------------------------

if __name__ == "__main__":
    B, S, H, ML = 2, 64, 128, 256       # small stand-ins for (B, 256, 1024, 256)

    key = jax.random.PRNGKey(0)
    k1, k2, k3, k4 = jax.random.split(key, 4)
    hidden_states = jax.random.normal(k1, (B, S, H), jnp.float32)
    token_type_ids = jax.random.randint(k2, (B, S), 0, ML, dtype=jnp.int32)
    weight = jax.random.normal(k3, (H, H), jnp.float32) * (1.0 / math.sqrt(H))
    bias = jax.random.normal(k4, (H,), jnp.float32) * 0.02

    seq = projection_layer(hidden_states, token_type_ids, weight, bias,
                           max_length=ML, with_cell_shape=False)
    cell = projection_layer(hidden_states, token_type_ids, weight, bias,
                            max_length=ML, with_cell_shape=True)
    jax.block_until_ready((seq, cell))

    ref_seq = _reference(hidden_states, token_type_ids, weight, bias,
                         max_length=ML, with_cell_shape=False)
    ref_cell = _reference(hidden_states, token_type_ids, weight, bias,
                          max_length=ML, with_cell_shape=True)
    assert jnp.allclose(seq, ref_seq, atol=5e-2, rtol=5e-2)
    assert jnp.allclose(cell, ref_cell, atol=5e-2, rtol=5e-2)

    print("KERNEL_OK")
</pallas_src>

<mosaic_0001>
module attributes {stable_mosaic.version = 11 : i64} {
  func.func @_projection_kernel(%arg0: i32, %arg1: memref<1x1x64xi32, #tpu.memory_space<vmem>>, %arg2: memref<1x64x1xi32, #tpu.memory_space<vmem>>, %arg3: memref<1x64x128xf32, #tpu.memory_space<vmem>>, %arg4: memref<128x128xbf16, #tpu.memory_space<vmem>>, %arg5: memref<1x128xf32, #tpu.memory_space<vmem>>, %arg6: memref<1x64x128xf32, #tpu.memory_space<vmem>>) attributes {dimension_semantics = [#tpu.dimension_semantics<parallel>], iteration_bounds = array<i64: 2>, scalar_prefetch = 0 : i64, scratch_operands = 0 : i64, tpu.core_type = #tpu.core_type<tc>, window_params = [{transform_indices = @transform_0, window_bounds = array<i64: 1, 1, 64>}, {transform_indices = @transform_1, window_bounds = array<i64: 1, 64, 1>}, {transform_indices = @transform_2, window_bounds = array<i64: 1, 64, 128>}, {pipeline_mode = #tpu.pipeline_mode<synchronous>, transform_indices = @transform_3, window_bounds = array<i64: 128, 128>}, {pipeline_mode = #tpu.pipeline_mode<synchronous>, transform_indices = @transform_4, window_bounds = array<i64: 1, 128>}, {transform_indices = @transform_5, window_bounds = array<i64: 1, 64, 128>}]} {
    %c0 = arith.constant 0 : index
    %c0_0 = arith.constant 0 : index
    %c0_1 = arith.constant 0 : index
    %0 = vector.load %arg3[%c0, %c0_0, %c0_1] : memref<1x64x128xf32, #tpu.memory_space<vmem>>, vector<1x64x128xf32>
    %1 = vector.shape_cast %0 : vector<1x64x128xf32> to vector<64x128xf32>
    %c0_2 = arith.constant 0 : index
    %c0_3 = arith.constant 0 : index
    %c0_4 = arith.constant 0 : index
    %2 = vector.load %arg1[%c0_2, %c0_3, %c0_4] : memref<1x1x64xi32, #tpu.memory_space<vmem>>, vector<1x1x64xi32>
    %3 = vector.shape_cast %2 : vector<1x1x64xi32> to vector<1x64xi32>
    %4 = tpu.iota {dimensions = array<i32: 0>} : vector<256x64xi32>
    %5 = vector.broadcast %3 : vector<1x64xi32> to vector<256x64xi32>
    %6 = arith.cmpi eq, %4, %5 : vector<256x64xi32>
    %7 = arith.extui %6 : vector<256x64xi1> to vector<256x64xi32>
    %8 = arith.sitofp %7 : vector<256x64xi32> to vector<256x64xf32>
    %9 = arith.truncf %8 : vector<256x64xf32> to vector<256x64xbf16>
    %10 = arith.truncf %1 : vector<64x128xf32> to vector<64x128xbf16>
    %cst = arith.constant dense<0.000000e+00> : vector<256x128xf32>
    %11 = tpu.matmul %9, %10, %cst {dimension_numbers = #tpu.dot_dimension_numbers<[1], [0], [0], [1], [0, 0, 1, 1], [], []>} : vector<256x64xbf16>, vector<64x128xbf16>, vector<256x128xf32> -> vector<256x128xf32>
    %12 = arith.truncf %11 : vector<256x128xf32> to vector<256x128xbf16>
    %c0_5 = arith.constant 0 : index
    %c0_6 = arith.constant 0 : index
    %13 = vector.load %arg4[%c0_5, %c0_6] : memref<128x128xbf16, #tpu.memory_space<vmem>>, vector<128x128xbf16>
    %cst_7 = arith.constant dense<0.000000e+00> : vector<256x128xf32>
    %14 = tpu.matmul %12, %13, %cst_7 {dimension_numbers = #tpu.dot_dimension_numbers<[1], [0], [0], [1], [0, 0, 1, 1], [], []>} : vector<256x128xbf16>, vector<128x128xbf16>, vector<256x128xf32> -> vector<256x128xf32>
    %c0_8 = arith.constant 0 : index
    %c0_9 = arith.constant 0 : index
    %15 = vector.load %arg5[%c0_8, %c0_9] : memref<1x128xf32, #tpu.memory_space<vmem>>, vector<1x128xf32>
    %16 = vector.broadcast %15 : vector<1x128xf32> to vector<256x128xf32>
    %17 = arith.addf %14, %16 : vector<256x128xf32>
    %cst_10 = arith.constant 5.000000e-01 : f32
    %18 = vector.broadcast %cst_10 : f32 to vector<256x128xf32>
    %19 = arith.mulf %18, %17 : vector<256x128xf32>
    %20 = arith.mulf %17, %17 : vector<256x128xf32>
    %21 = arith.mulf %20, %17 : vector<256x128xf32>
    %cst_11 = arith.constant 4.471500e-02 : f32
    %22 = vector.broadcast %cst_11 : f32 to vector<256x128xf32>
    %23 = arith.mulf %22, %21 : vector<256x128xf32>
    %24 = arith.addf %17, %23 : vector<256x128xf32>
    %cst_12 = arith.constant 0.797884583 : f32
    %25 = vector.broadcast %cst_12 : f32 to vector<256x128xf32>
    %26 = arith.mulf %25, %24 : vector<256x128xf32>
    %27 = math.tanh %26 : vector<256x128xf32>
    %cst_13 = arith.constant 1.000000e+00 : f32
    %28 = vector.broadcast %cst_13 : f32 to vector<256x128xf32>
    %29 = arith.addf %28, %27 : vector<256x128xf32>
    %30 = arith.mulf %19, %29 : vector<256x128xf32>
    %c0_14 = arith.constant 0 : index
    %c0_15 = arith.constant 0 : index
    %c0_16 = arith.constant 0 : index
    %31 = vector.load %arg2[%c0_14, %c0_15, %c0_16] : memref<1x64x1xi32, #tpu.memory_space<vmem>>, vector<1x64x1xi32>
    %32 = vector.shape_cast %31 : vector<1x64x1xi32> to vector<64x1xi32>
    %33 = tpu.iota {dimensions = array<i32: 1>} : vector<64x256xi32>
    %34 = vector.broadcast %32 : vector<64x1xi32> to vector<64x256xi32>
    %35 = arith.cmpi eq, %33, %34 : vector<64x256xi32>
    %36 = arith.extui %35 : vector<64x256xi1> to vector<64x256xi32>
    %37 = arith.sitofp %36 : vector<64x256xi32> to vector<64x256xf32>
    %38 = arith.truncf %37 : vector<64x256xf32> to vector<64x256xbf16>
    %39 = arith.truncf %30 : vector<256x128xf32> to vector<256x128xbf16>
    %cst_17 = arith.constant dense<0.000000e+00> : vector<64x128xf32>
    %40 = tpu.matmul %38, %39, %cst_17 {dimension_numbers = #tpu.dot_dimension_numbers<[1], [0], [0], [1], [0, 0, 1, 1], [], []>} : vector<64x256xbf16>, vector<256x128xbf16>, vector<64x128xf32> -> vector<64x128xf32>
    %c0_18 = arith.constant 0 : index
    %c0_19 = arith.constant 0 : index
    %c0_20 = arith.constant 0 : index
    %41 = vector.load %arg6[%c0_18, %c0_19, %c0_20] : memref<1x64x128xf32, #tpu.memory_space<vmem>>, vector<1x64x128xf32>
    %42 = vector.shape_cast %41 : vector<1x64x128xf32> to vector<64x128xf32>
    %43 = vector.shape_cast %40 : vector<64x128xf32> to vector<1x64x128xf32>
    tpu.vector_store %arg6[%c0_18, %c0_19, %c0_20], %43 {strides = array<i32>} : memref<1x64x128xf32, #tpu.memory_space<vmem>>, vector<1x64x128xf32>,
    return
  }
  func.func @transform_0(%arg0: i32) -> (i32, i32, i32) {
    %c0_i32 = arith.constant 0 : i32
    %c0_i32_0 = arith.constant 0 : i32
    %c0_i32_1 = arith.constant 0 : i32
    return %arg0, %c0_i32, %c0_i32_0 : i32, i32, i32
  }
  func.func @transform_1(%arg0: i32) -> (i32, i32, i32) {
    %c0_i32 = arith.constant 0 : i32
    %c0_i32_0 = arith.constant 0 : i32
    %c0_i32_1 = arith.constant 0 : i32
    return %arg0, %c0_i32, %c0_i32_0 : i32, i32, i32
  }
  func.func @transform_2(%arg0: i32) -> (i32, i32, i32) {
    %c0_i32 = arith.constant 0 : i32
    %c0_i32_0 = arith.constant 0 : i32
    %c0_i32_1 = arith.constant 0 : i32
    return %arg0, %c0_i32, %c0_i32_0 : i32, i32, i32
  }
  func.func @transform_3(%arg0: i32) -> (i32, i32) {
    %c0_i32 = arith.constant 0 : i32
    %c0_i32_0 = arith.constant 0 : i32
    %c0_i32_1 = arith.constant 0 : i32
    return %c0_i32, %c0_i32_0 : i32, i32
  }
  func.func @transform_4(%arg0: i32) -> (i32, i32) {
    %c0_i32 = arith.constant 0 : i32
    %c0_i32_0 = arith.constant 0 : i32
    %c0_i32_1 = arith.constant 0 : i32
    return %c0_i32, %c0_i32_0 : i32, i32
  }
  func.func @transform_5(%arg0: i32) -> (i32, i32, i32) {
    %c0_i32 = arith.constant 0 : i32
    %c0_i32_0 = arith.constant 0 : i32
    %c0_i32_1 = arith.constant 0 : i32
    return %arg0, %c0_i32, %c0_i32_0 : i32, i32, i32
  }
}

</mosaic_0001>

<bundles_post_ra>
// kernel: tpu_custom_call.1
= control target key start
LH: loop header
LB: loop body
LE: loop exit
PB: predicated region body
PF: predicated region fallthrough
CT: control target
= control target key end

     0   :  { %10 = vsyncpa [#allocation3], 0  ;;  %s2606_s0 = inlined_call_operand.vmem [shape: s32[2,1,64], index: 0, kind: input, shape index: {}]   ;;  %s2607_s1 = inlined_call_operand.vmem [shape: s32[2,64,1], index: 1, kind: input, shape index: {}]   ;;  %s2608_s2 = inlined_call_operand.vmem [shape: f32[2,64,128], index: 2, kind: input, shape index: {}]   ;;  %s2609_s3 = inlined_call_operand.hbm [shape: bf16[128,128], index: 3, kind: input, shape index: {}]   ;;  %s2610_s4 = inlined_call_operand.vmem [shape: f32[1,128], index: 4, kind: input, shape index: {}]   ;;  %s2611_s5 = inlined_call_operand.hbm [shape: f32[2,64,128], index: 5, kind: output, shape index: {}]  }
   0x1   :  { %11 = vsyncpa [#allocation4], 0 }
   0x2   :  { %13 = vsyncpa [#allocation4 + $0x1], 0  ;;  %s2033_s18 = smov 0   ;;  %s2035_s19 = smov 0  }
   0x3   :  { %s2037_s20 = smov 0   ;;  %s2039_s21 = smov 0  }
   0x4 LB: > { %s2054_s22 = sadd.s32 4294967295, %s1992_s21   ;;  %s1470_s23 = sadd.s32 4294967294, %s1992_s21   ;;  %s1992_s21 = sphi %s2039_s21, %s2673_s21   ;;  %s1988_s20 = sphi %s2037_s20, %s2672_s20   ;;  %s1984_s19 = sphi %s2035_s19, %s2671_s19   ;;  %s1980_s18 = sphi %s2033_s18, %s2670_s18  }
   0x5   : > { %s2058_s24 = sadd.s32 1, %s1992_s21   ;;  %s146_s25 = sadd.s32 1, %s1988_s20 }
   0x6   : > { %s143_s26 = ssub.s32 %s1992_s21, %s2058_s24  ;;  %p156_p0 = scmp.ne.s32.totalorder %s1988_s20, %s1984_s19 }
   0x7   : > { %p144_p1 = scmp.eq.s32.totalorder %s143_s26, 0  ;;  %p157_p2 = scmp.eq.s32.totalorder %s2054_s22, 1 }
   0x8   : > { %p162_p3 = scmp.ne.s32.totalorder %s1984_s19, %s1980_s18  ;;  %p163_p4 = scmp.eq.s32.totalorder %s1470_s23, 1 }
   0x9   : > { %s2069_s27 = scalar_select %p144_p1, %s1988_s20, %s146_s25  }
   0xa   : > { %p2071_p5 = por %p157_p2, %p156_p0  ;;  %p2075_p6 = por %p163_p4, %p162_p3 }
   0xb   : > { %p1471_p7 = scmp.ge.s32.totalorder %s1992_s21, 1  ;;  %p170_p8 = scmp.lt.s32.totalorder %s1992_s21, 3 }
   0xc   : > { %s2624_s28 = scalar_select %p2071_p5, 1, 0 }
   0xd   : > { %s2625_s29 = scalar_select %p2075_p6, 1, 0 }
   0xe   : > { %p2612_p9 = scmp.eq.s32.totalorder %s2054_s22, 0  ;;  %p2082_p10 = pnand %p1471_p7, %p170_p8 }
   0xf   : > { %s1994_s6 = smov [#allocation2]   ;;  %s1898_s11 = scalar_lea.hbm %s2609_s3, 1024 }
  0x10   : > { %s2626_s30 = scalar_select %p2082_p10, 1, 0 }
  0x11   : > { %s182_s7 = sshll.u32 %s1994_s6, 4  ;;  %p1773_p11 = pneg %p2082_p10  ;;  %s183_s7 = int_to_ptr.vmem [resolvable:$true] %s182_s7 }
  0x12   : > { %p1899_p13 = scmp.ne.s32.totalorder %s2609_s3, %s1898_s11  ;;  %p1905_p3 = scmp.lt.u32.totalorder %s1898_s11, %s2609_s3 }
  0x13   : > { %p2090_p12 = pnand %p2612_p9, %p1773_p11 }
  0x15   : > { %p1900_p0 = pneg %p2090_p12 }
  0x17   : > { %p1901_p1 = pnand %p1900_p0, %p1899_p13 }
  0x19   : > { %p1902_p2 = pneg %p1901_p1 }
  0x1b   : > { %p1907_p4 = pnand %p1905_p3, %p1902_p2 }
  0x1d   : > { %1910 = shalt.err (!%p1907_p4)
}
  0x1e   : > { %s1911_s16 = scalar_lea.vmem %s183_s7, 1024  ;;  %p1919_p9 = scmp.lt.s32.totalorder %s183_s7, %s183_s7 }
  0x1f   : > { %p1912_p7 = scmp.ne.s32.totalorder %s183_s7, %s1911_s16  ;;  %p1920_p6 = scmp.lt.s32.totalorder %s1911_s16, %s1911_s16 }
  0x21   : > { %p1914_p8 = pnand %p1912_p7, %p1900_p0  ;;  %p1921_p5 = por %p1920_p6, %p1919_p9 }
  0x23   : > { %p1915_p11 = pneg %p1914_p8 }
  0x25   : > { %p1922_p10 = pnand %p1921_p5, %p1915_p11 }
  0x27   : > { %1925 = shalt.err (!%p1922_p10)
}
  0x28   : > { %s1995_s17 = smov 64   ;;  %s1996_s23 = smov 4  }
  0x29   : > { %1776 = dma.hbm_to_vmem [thread:$0]  (!%p2090_p12), %s2609_s3, 1024, %s183_s7, [#allocation3], %s1995_s17, %s1995_s17, %s1996_s23  }
  0x2a   : > { %p2628_p13 = scmp.ne.s32.totalorder %s2626_s30, 0 }
  0x2c   : > { %223 = sbr.rel (%p2628_p13) target bundleno = 857 (0x359), region = 40 }
  0x33   : > { %p2629_p1 = scmp.eq.s32.totalorder %s2054_s22, 0 }
  0x35   : > { %1971 = dma.done.wait (%p2629_p1), [#allocation3], 1024   ;;  %p2630_p0 = pmov %p2629_p1 }
  0x36   : > { %p259_p5 = scmp.lt.s32.totalorder %s2054_s22, 1  ;;  %v282_v0 = vlaneseq  ;;  %v1997_v12 = vmov 0.0   ;;  %vm435_vm2 = vcmask 523264   ;;  %v1826_v16 = vld [vmem:[#allocation2] sm:$0xff]   ;;  %v1827_v17 = vld [vmem:[#allocation2 + $0x8] sm:$0xff]   ;;  %v1828_v25 = vld [vmem:[#allocation2 + $0x10] sm:$0xff]  }
  0x37   : > { %1973 = vsyncadd (%p2630_p0), [#allocation3], 4294966272  ;;  %1703 = vmatprep.subr.bf16.mxu1 %v1826_v16  ;;  %v1829_v29 = vld [vmem:[#allocation2 + $0x18] sm:$0xff]   ;;  %v1830_v38 = vld [vmem:[#allocation2 + $0x20] sm:$0xff]   ;;  %s256_s23 = sand.u32 1, %s1984_s19   ;;  %s1578_s30 = sshll.u32 %s2054_s22, 10 }
  0x38   : > { %s2118_s6 = scalar_select %p259_p5, %s2054_s22, 1  ;;  %v2121_v1 = vshrl.u32 %v282_v0, 7  ;;  %1704 = vmatpush3.bf16.msra.mxu1 %v1826_v16  ;;  %v1831_v41 = vld [vmem:[#allocation2 + $0x28] sm:$0xff]   ;;  %v1832_v52 = vld [vmem:[#allocation2 + $0x30] sm:$0xff]  }
  0x39   : > { %1705 = vmatprep.subr.bf16.mxu1 %v1827_v17  ;;  %s1476_s25 = sshll.u32 %s256_s23, 6  ;;  %s2565_s10 = scalar_lea.sflag [#allocation4], %s256_s23 }
  0x3a   : > { %s261_s8 = scalar_lea.vmem %s2606_s0, %s2118_s6  ;;  %s1576_s9 = sshll.u32 %s2118_s6, 6  ;;  %v284_v2 = vadd.s32 8, %v2121_v1  ;;  %v285_v19 = vadd.s32 16, %v2121_v1  ;;  %v286_v20 = vadd.s32 24, %v2121_v1  ;;  %v287_v23 = vadd.s32 32, %v2121_v1 }
  0x3b   : > { %s271_s12 = scalar_lea.vmem %s2608_s2, %s1576_s9  ;;  %v2134_v5 = vld [vmem:[%s261_s8] ss:$0 sm:$0xff]  ;;  %v288_v24 = vadd.s32 40, %v2121_v1  ;;  %v289_v32 = vadd.s32 48, %v2121_v1  ;;  %v290_v33 = vadd.s32 56, %v2121_v1  ;;  %v291_v34 = vadd.s32 64, %v2121_v1  ;;  %s266_s15 = scalar_lea.vmem %s2607_s1, %s1576_s9 }
  0x3c   : > { %v273_v3 = vld [vmem:[%s271_s12] sm:$0xff]  ;;  %v274_v4 = vld [vmem:[%s271_s12 + $0x8] sm:$0xff]  ;;  %v275_v7 = vld [vmem:[%s271_s12 + $0x10] sm:$0xff]  ;;  %vm319_vm0 = vcmp.eq.s32.totalorder %v2121_v1, %v2134_v5  ;;  %vm320_vm1 = vcmp.eq.s32.totalorder %v284_v2, %v2134_v5  ;;  %vm321_vm3 = vcmp.eq.s32.totalorder %v285_v19, %v2134_v5  ;;  %vm322_vm4 = vcmp.eq.s32.totalorder %v286_v20, %v2134_v5  ;;  %1706 = vmatpush3.bf16.msra.mxu1 %v1827_v17  ;;  %s258_s26 = scalar_lea.vmem [#allocation5], %s1476_s25  ;;  %s2561_s9 = scalar_lea.hbm %s2611_s5, %s1578_s30 }
  0x3d   : > { %v431_v6 = vpack.c.bf16 %v274_v4, %v273_v3  ;;  %v276_v8 = vld [vmem:[%s271_s12 + $0x18] sm:$0xff]  ;;  %v277_v10 = vld [vmem:[%s271_s12 + $0x20] sm:$0xff]  ;;  %v278_v11 = vld [vmem:[%s271_s12 + $0x28] sm:$0xff]  ;;  %v1482_v13 = vsel %vm319_vm0, 1.0, %v1997_v12  ;;  %v1483_v14 = vsel %vm320_vm1, 1.0, %v1997_v12  ;;  %vm323_vm5 = vcmp.eq.s32.totalorder %v287_v23, %v2134_v5  ;;  %1707 = vmatprep.subr.bf16.mxu1 %v1828_v25  ;;  %s1375_s6 = sshll.u32 %s258_s26, 4  ;;  %s2556_s6 = int_to_ptr.vmem [resolvable:$true] %s1375_s6 }
  0x3e   : > { %v432_v9 = vpack.c.bf16 %v276_v8, %v275_v7  ;;  %v415_v15 = vpack.c.bf16 %v1483_v14, %v1482_v13  ;;  %v433_v18 = vpack.c.bf16 %v278_v11, %v277_v10  ;;  %v279_v21 = vld [vmem:[%s271_s12 + $0x30] sm:$0xff]  ;;  %v280_v22 = vld [vmem:[%s271_s12 + $0x38] sm:$0xff]  ;;  %vm324_vm6 = vcmp.eq.s32.totalorder %v288_v24, %v2134_v5  ;;  %s1926_s22 = scalar_lea.vmem %s2556_s6, 1024  ;;  %p2668_p9 = scmp.ne.s32.totalorder %s2624_s28, 0 }
  0x3f   : > { %1663 = vmatprep.subr.bf16.mxu0 %v431_v6  ;;  %v434_v26 = vpack.c.bf16 %v280_v22, %v279_v21  ;;  %v1484_v27 = vsel %vm321_vm3, 1.0, %v1997_v12  ;;  %v1485_v28 = vsel %vm322_vm4, 1.0, %v1997_v12  ;;  %v1486_v30 = vsel %vm323_vm5, 1.0, %v1997_v12  ;;  %p1927_p6 = scmp.ne.s32.totalorder %s2556_s6, %s1926_s22  ;;  %s2000_s11 = smov [#allocation5]  }
  0x40   : > { %1664 = vmatpush3.bf16.msra.mxu0 %v431_v6  ;;  %1671 = vmatprep.mubr.msk.bf16.mxu0 %vm435_vm2, %v415_v15  ;;  %v1487_v31 = vsel %vm324_vm6, 1.0, %v1997_v12  ;;  %v292_v35 = vadd.s32 72, %v2121_v1  ;;  %v416_v36 = vpack.c.bf16 %v1485_v28, %v1484_v27  ;;  %vm325_vm7 = vcmp.eq.s32.totalorder %v289_v32, %v2134_v5  ;;  %s1930_s12 = sshll.u32 %s2000_s11, 4  ;;  %s1931_s12 = int_to_ptr.vmem [resolvable:$false] %s1930_s12 }
  0x41   : > { %1665 = vmatprep.subr.bf16.mxu0 %v432_v9  ;;  %1708 = vmatpush3.bf16.msra.mxu1 %v1828_v25  ;;  %v417_v37 = vpack.c.bf16 %v1487_v31, %v1486_v30  ;;  %vm326_vm8 = vcmp.eq.s32.totalorder %v290_v33, %v2134_v5  ;;  %vm327_vm9 = vcmp.eq.s32.totalorder %v291_v34, %v2134_v5  ;;  %v1488_v39 = vsel %vm325_vm7, 1.0, %v1997_v12  ;;  %p1928_p10 = pnand %p1927_p6, %p2668_p9  ;;  %s1932_s13 = scalar_lea.vmem %s1931_s12, 2048 }
  0x42   : > { %1709 = vmatprep.subr.bf16.mxu1 %v1829_v29  ;;  %vm328_vm10 = vcmp.eq.s32.totalorder %v292_v35, %v2134_v5  ;;  %v1489_v40 = vsel %vm326_vm8, 1.0, %v1997_v12  ;;  %v1490_v42 = vsel %vm327_vm9, 1.0, %v1997_v12  ;;  %v293_v44 = vadd.s32 80, %v2121_v1  ;;  %p1933_p2 = scmp.lt.s32.totalorder %s2556_s6, %s1931_s12  ;;  %p1934_p3 = scmp.lt.s32.totalorder %s1932_s13, %s1926_s22 }
  0x43   : > { %v1491_v43 = vsel %vm328_vm10, 1.0, %v1997_v12  ;;  %v294_v45 = vadd.s32 88, %v2121_v1  ;;  %v295_v46 = vadd.s32 96, %v2121_v1  ;;  %v296_v47 = vadd.s32 104, %v2121_v1  ;;  %p1929_p12 = pneg %p1928_p10 }
  0x44   : > { %1666 = vmatpush3.bf16.msra.mxu0 %v432_v9  ;;  %v418_v48 = vpack.c.bf16 %v1489_v40, %v1488_v39  ;;  %v313_v49 = vadd.s32 240, %v2121_v1  ;;  %v314_v50 = vadd.s32 248, %v2121_v1  ;;  %v419_v51 = vpack.c.bf16 %v1491_v43, %v1490_v42  ;;  %v1183_v42 = vld [vmem:[%s266_s15 + $0x10] sm:$0xff]  ;;  %v1182_v43 = vld [vmem:[%s266_s15 + $0x8] sm:$0xff]  ;;  %p1935_p4 = por %p1934_p3, %p1933_p2 }
  0x45   : > { %1667 = vmatprep.subr.bf16.mxu0 %v433_v18  ;;  %1710 = vmatpush3.bf16.msra.mxu1 %v1829_v29  ;;  %vm329_vm11 = vcmp.eq.s32.totalorder %v293_v44, %v2134_v5  ;;  %vm330_vm12 = vcmp.eq.s32.totalorder %v294_v45, %v2134_v5  ;;  %vm331_vm15 = vcmp.eq.s32.totalorder %v295_v46, %v2134_v5  ;;  %v297_v60 = vadd.s32 112, %v2121_v1  ;;  %v1184_v44 = vld [vmem:[%s266_s15 + $0x18] sm:$0xff]  ;;  %v1186_v45 = vld [vmem:[%s266_s15 + $0x28] sm:$0xff]  ;;  %v1185_v46 = vld [vmem:[%s266_s15 + $0x20] sm:$0xff] }
  0x46   : > { %1711 = vmatprep.subr.bf16.mxu1 %v1830_v38  ;;  %vm349_vm13 = vcmp.eq.s32.totalorder %v313_v49, %v2134_v5  ;;  %vm350_vm14 = vcmp.eq.s32.totalorder %v314_v50, %v2134_v5  ;;  %vm332_vm0 = vcmp.eq.s32.totalorder %v296_v47, %v2134_v5  ;;  %v1492_v56 = vsel %vm329_vm11, 1.0, %v1997_v12  ;;  %v1188_v47 = vld [vmem:[%s266_s15 + $0x38] sm:$0xff]  ;;  %p1936_p7 = pnand %p1935_p4, %p1929_p12 }
  0x47   : > { %v2181_v53 = vsel %vm349_vm13, 1.0, %v1997_v12  ;;  %v2184_v54 = vsel %vm350_vm14, 1.0, %v1997_v12  ;;  %v1493_v57 = vsel %vm330_vm12, 1.0, %v1997_v12  ;;  %v1494_v58 = vsel %vm331_vm15, 1.0, %v1997_v12 }
  0x48   : > { %1668 = vmatpush3.bf16.msra.mxu0 %v433_v18  ;;  %v430_v55 = vpack.c.bf16 %v2184_v54, %v2181_v53  ;;  %v1495_v59 = vsel %vm332_vm0, 1.0, %v1997_v12  ;;  %v298_v61 = vadd.s32 120, %v2121_v1  ;;  %v299_v62 = vadd.s32 128, %v2121_v1 }
  0x49   : > { %1669 = vmatprep.subr.bf16.mxu0 %v434_v26  ;;  %1712 = vmatpush3.bf16.msra.mxu1 %v1830_v38  ;;  %v300_v63 = vadd.s32 136, %v2121_v1  ;;  %v420_v2 = vpack.c.bf16 %v1493_v57, %v1492_v56  ;;  %v421_v3 = vpack.c.bf16 %v1495_v59, %v1494_v58  ;;  %vm333_vm1 = vcmp.eq.s32.totalorder %v297_v60, %v2134_v5 }
  0x4a   : > { %1713 = vmatprep.subr.bf16.mxu1 %v1831_v41  ;;  %vm334_vm3 = vcmp.eq.s32.totalorder %v298_v61, %v2134_v5  ;;  %vm335_vm4 = vcmp.eq.s32.totalorder %v299_v62, %v2134_v5  ;;  %v1496_v4 = vsel %vm333_vm1, 1.0, %v1997_v12  ;;  %v301_v9 = vadd.s32 144, %v2121_v1 }
  0x4b   : > { %vm336_vm5 = vcmp.eq.s32.totalorder %v300_v63, %v2134_v5  ;;  %v1497_v6 = vsel %vm334_vm3, 1.0, %v1997_v12  ;;  %v1498_v7 = vsel %vm335_vm4, 1.0, %v1997_v12  ;;  %v302_v10 = vadd.s32 152, %v2121_v1 }
  0x4c   : > { %1670 = vmatpush3.bf16.msra.mxu0 %v434_v26  ;;  %v1499_v8 = vsel %vm336_vm5, 1.0, %v1997_v12  ;;  %v303_v11 = vadd.s32 160, %v2121_v1  ;;  %v304_v13 = vadd.s32 168, %v2121_v1  ;;  %v422_v14 = vpack.c.bf16 %v1497_v6, %v1496_v4 }
  0x4d   : > { %1714 = vmatpush3.bf16.msra.mxu1 %v1831_v41  ;;  %v423_v15 = vpack.c.bf16 %v1499_v8, %v1498_v7  ;;  %vm337_vm6 = vcmp.eq.s32.totalorder %v301_v9, %v2134_v5  ;;  %vm338_vm7 = vcmp.eq.s32.totalorder %v302_v10, %v2134_v5  ;;  %v305_v20 = vadd.s32 176, %v2121_v1  ;;  %v1181_v41 = vld [vmem:[%s266_s15] sm:$0xff] }
  0x4e   : > { %1715 = vmatprep.subr.bf16.mxu1 %v1832_v52  ;;  %vm339_vm8 = vcmp.eq.s32.totalorder %v303_v11, %v2134_v5  ;;  %vm340_vm9 = vcmp.eq.s32.totalorder %v304_v13, %v2134_v5  ;;  %v1500_v16 = vsel %vm337_vm6, 1.0, %v1997_v12  ;;  %v1501_v17 = vsel %vm338_vm7, 1.0, %v1997_v12 }
  0x4f   : > { %1672 = vmatmul.mubr.msk.bf16.vlgmr.msra.gmra.mrb[0].mxu0 %vm435_vm2, %v416_v36  ;;  %v1502_v18 = vsel %vm339_vm8, 1.0, %v1997_v12  ;;  %v1503_v19 = vsel %vm340_vm9, 1.0, %v1997_v12  ;;  %v306_v21 = vadd.s32 184, %v2121_v1  ;;  %v307_v22 = vadd.s32 192, %v2121_v1 }
  0x50   : > { %1675 = vmatprep.mubr.msk.bf16.mxu0 %vm435_vm2, %v417_v37  ;;  %v308_v23 = vadd.s32 200, %v2121_v1  ;;  %v424_v24 = vpack.c.bf16 %v1501_v17, %v1500_v16  ;;  %v425_v25 = vpack.c.bf16 %v1503_v19, %v1502_v18  ;;  %vm341_vm10 = vcmp.eq.s32.totalorder %v305_v20, %v2134_v5 }
  0x51   : > { %1716 = vmatpush3.bf16.msra.mxu1 %v1832_v52  ;;  %vm342_vm11 = vcmp.eq.s32.totalorder %v306_v21, %v2134_v5  ;;  %vm343_vm12 = vcmp.eq.s32.totalorder %v307_v22, %v2134_v5  ;;  %v1504_v26 = vsel %vm341_vm10, 1.0, %v1997_v12  ;;  %v309_v30 = vadd.s32 208, %v2121_v1 }
  0x52   : > { %vm344_vm13 = vcmp.eq.s32.totalorder %v308_v23, %v2134_v5  ;;  %v1505_v27 = vsel %vm342_vm11, 1.0, %v1997_v12  ;;  %v1506_v28 = vsel %vm343_vm12, 1.0, %v1997_v12  ;;  %v310_v31 = vadd.s32 216, %v2121_v1 }
  0x53   : > { %v1507_v29 = vsel %vm344_vm13, 1.0, %v1997_v12  ;;  %v311_v32 = vadd.s32 224, %v2121_v1  ;;  %v312_v33 = vadd.s32 232, %v2121_v1  ;;  %v426_v34 = vpack.c.bf16 %v1505_v27, %v1504_v26 }
  0x54   : > { %v427_v35 = vpack.c.bf16 %v1507_v29, %v1506_v28  ;;  %vm345_vm14 = vcmp.eq.s32.totalorder %v309_v30, %v2134_v5  ;;  %vm346_vm15 = vcmp.eq.s32.totalorder %v310_v31, %v2134_v5 }
  0x55   : > { %vm347_vm0 = vcmp.eq.s32.totalorder %v311_v32, %v2134_v5  ;;  %vm348_vm1 = vcmp.eq.s32.totalorder %v312_v33, %v2134_v5  ;;  %v1508_v36 = vsel %vm345_vm14, 1.0, %v1997_v12  ;;  %v1509_v37 = vsel %vm346_vm15, 1.0, %v1997_v12  ;;  %v1833_v5 = vld [vmem:[#allocation2 + $0x38] sm:$0xff]  }
  0x56   : > { %v1510_v1 = vsel %vm347_vm0, 1.0, %v1997_v12  ;;  %v1511_v38 = vsel %vm348_vm1, 1.0, %v1997_v12  ;;  %v428_v39 = vpack.c.bf16 %v1509_v37, %v1508_v36  ;;  %1717 = vmatprep.subr.bf16.mxu1 %v1833_v5  ;;  %v1998_v12 = vmov 0  }
  0x57   : > { %1676 = vmatmul.mubr.msk.bf16.gmra.mrb[4].mxu0 %vm435_vm2, %v418_v48  ;;  %v429_v40 = vpack.c.bf16 %v1511_v38, %v1510_v1  ;;  %1718 = vmatpush3.bf16.msra.mxu1 %v1833_v5  ;;  %v1187_v48 = vld [vmem:[%s266_s15 + $0x30] sm:$0xff]  ;;  %v1190_v37 = vand.u32 127, %v282_v0  ;;  %v2634_v0 = vmov 0 }
  0x58   : > { %1679 = vmatprep.mubr.msk.bf16.mxu0 %vm435_vm2, %v419_v51  ;;  %1824 = vset.pattern.permute.xlu0 %v1998_v12 }
  0x59   : > { %1825 = vset.pattern.permute.xlu1 %v1998_v12  ;;  %1193 = vperm.xlu0 %1824, %v1181_v41   ;;  %v2631_v12 = vmov 0  ;;  %v2615_v41 = vmov 1.0|1.0  }
  0x5a   : > { %1199 = vperm.xlu1 %1825, %v1183_v42  }
  0x5d   : > { %1196 = vperm.xlu0 %1824, %v1182_v43  }
  0x5e   : > { %1202 = vperm.xlu1 %1825, %v1184_v44   ;;  %v2637_v44 = vmov 0 }
  0x5f   : > { %1680 = vmatmul.mubr.msk.bf16.gmra.mrb[8].mxu0 %vm435_vm2, %v420_v2 }
  0x60   : > { %1683 = vmatprep.mubr.msk.bf16.mxu0 %vm435_vm2, %v421_v3 }
  0x61   : > { %1205 = vperm.xlu0 %1824, %v1185_v46   ;;  %v2643_v46 = vmov 0 }
  0x62   : > { %1208 = vperm.xlu1 %1825, %v1186_v45   ;;  %v2640_v45 = vmov 0 }
  0x65   : > { %1211 = vperm.xlu0 %1824, %v1187_v48  }
  0x66   : > { %1214 = vperm.xlu1 %1825, %v1188_v47  }
  0x67   : > { %1684 = vmatmul.mubr.msk.bf16.gmra.mrb[12].mxu0 %vm435_vm2, %v422_v14 }
  0x68   : > { %1687 = vmatprep.mubr.msk.bf16.mxu0 %vm435_vm2, %v423_v15 }
  0x6f   : > { %1688 = vmatmul.mubr.msk.bf16.gmra.mrb[16].mxu0 %vm435_vm2, %v424_v24 }
  0x70   : > { %1691 = vmatprep.mubr.msk.bf16.mxu0 %vm435_vm2, %v425_v25 }
  0x77   : > { %1692 = vmatmul.mubr.msk.bf16.gmra.mrb[20].mxu0 %vm435_vm2, %v426_v34 }
  0x78   : > { %1695 = vmatprep.mubr.msk.bf16.mxu0 %vm435_vm2, %v427_v35 }
  0x7f   : > { %1696 = vmatmul.mubr.msk.bf16.gmra.mrb[24].mxu0 %vm435_vm2, %v428_v39  ;;  %v1191_v39 = vadd.s32 128, %v1190_v37 }
  0x80   : > { %1699 = vmatprep.mubr.msk.bf16.mxu0 %vm435_vm2, %v429_v40 }
  0x87   : > { %1700 = vmatmul.mubr.msk.bf16.gmra.mrb[28].mxu0 %vm435_vm2, %v430_v55 }
  0xd8   : > { %v1194_v1 = vpop.permute.xlu0 %1193 }
  0xd9   : > { %v1200_v38 = vpop.permute.xlu1 %1199  ;;  %vm1216_vm2 = vcmp.eq.s32.totalorder %v1190_v37, %v1194_v1  ;;  %vm1217_vm4 = vcmp.eq.s32.totalorder %v1191_v39, %v1194_v1 }
  0xda   : > { %vm1220_vm3 = vcmp.eq.s32.totalorder %v1190_v37, %v1200_v38  ;;  %vm1221_vm5 = vcmp.eq.s32.totalorder %v1191_v39, %v1200_v38 }
  0xdc   : > { %v1197_v40 = vpop.permute.xlu0 %1196 }
  0xdd   : > { %v1203_v5 = vpop.permute.xlu1 %1202  ;;  %vm1218_vm6 = vcmp.eq.s32.totalorder %v1190_v37, %v1197_v40  ;;  %vm1219_vm7 = vcmp.eq.s32.totalorder %v1191_v39, %v1197_v40 }
  0xde   : > { %vm1222_vm8 = vcmp.eq.s32.totalorder %v1190_v37, %v1203_v5  ;;  %vm1223_vm9 = vcmp.eq.s32.totalorder %v1191_v39, %v1203_v5  ;;  %vm1555_vm10 = vmpackc.low %vm1219_vm7, %vm1217_vm4 }
  0xdf   : > { %vm2262_vm11 = vmpackc.low %vm1218_vm6, %vm1216_vm2  ;;  %1556 = vmatprep.mubr.msk.bf16.mxu0 %vm1555_vm10, %v2615_v41 }
  0xe0   : > { %v2632_v12 = vsel %vm2262_vm11, 4294967295, %v2631_v12  ;;  %vm2267_vm12 = vmpackc.low %vm1223_vm9, %vm1221_vm5  ;;  %v1206_v43 = vpop.permute.xlu0 %1205 }
  0xe1   : > { %2633 = vst [vmem:[#allocation8_spill] sm:$0xff] %v2632_v12  ;;  %v2635_v0 = vsel %vm2267_vm12, 4294967295, %v2634_v0  ;;  %v1209_v42 = vpop.permute.xlu1 %1208  ;;  %vm2272_vm13 = vmpackc.low %vm1222_vm8, %vm1220_vm3  ;;  %vm1224_vm0 = vcmp.eq.s32.totalorder %v1190_v37, %v1206_v43  ;;  %vm1225_vm1 = vcmp.eq.s32.totalorder %v1191_v39, %v1206_v43 }
  0xe2   : > { %2636 = vst [vmem:[#allocation9_spill] sm:$0xff] %v2635_v0  ;;  %v2638_v44 = vsel %vm2272_vm13, 4294967295, %v2637_v44  ;;  %vm1226_vm14 = vcmp.eq.s32.totalorder %v1190_v37, %v1209_v42  ;;  %vm1227_vm15 = vcmp.eq.s32.totalorder %v1191_v39, %v1209_v42 }
  0xe3   : > { %2639 = vst [vmem:[#allocation10_spill] sm:$0xff] %v2638_v44  ;;  %vm2276_vm2 = vmpackc.low %vm1227_vm15, %vm1225_vm1 }
  0xe4   : > { %v2641_v45 = vsel %vm2276_vm2, 4294967295, %v2640_v45  ;;  %vm2280_vm4 = vmpackc.low %vm1226_vm14, %vm1224_vm0  ;;  %v1212_v48 = vpop.permute.xlu0 %1211 }
  0xe5   : > { %2642 = vst [vmem:[#allocation11_spill] sm:$0xff] %v2641_v45  ;;  %v2644_v46 = vsel %vm2280_vm4, 4294967295, %v2643_v46  ;;  %v1215_v47 = vpop.permute.xlu1 %1214  ;;  %vm1228_vm3 = vcmp.eq.s32.totalorder %v1190_v37, %v1212_v48  ;;  %vm1229_vm7 = vcmp.eq.s32.totalorder %v1191_v39, %v1212_v48 }
  0xe6   : > { %2645 = vst [vmem:[#allocation12_spill] sm:$0xff] %v2644_v46  ;;  %vm1230_vm5 = vcmp.eq.s32.totalorder %v1190_v37, %v1215_v47  ;;  %vm1231_vm6 = vcmp.eq.s32.totalorder %v1191_v39, %v1215_v47 }
  0xe7   : > { %vm1567_vm8 = vmpackc.low %vm1231_vm6, %vm1229_vm7 }
  0xe8   : > { %vm2284_vm9 = vmpackc.low %vm1230_vm5, %vm1228_vm3 }
 0x122   : > { %v1673_v49 = vpop.f32.mrb[0].mxu0 }
 0x123   : > { %v518_v50 = vpop.f32.mrb[1].mxu0 }
 0x124   : > { %v1674_v51 = vpop.f32.mrb[2].mxu0 }
 0x125   : > { %v646_v52 = vpack.c.bf16 %v1674_v51, %v1673_v49  ;;  %v521_v53 = vpop.f32.mrb[3].mxu0  ;;  %v2646_v49 = vmov 0 }
 0x126   : > { %v645_v54 = vpack.c.bf16 %v521_v53, %v518_v50  ;;  %v2647_v49 = vsel %vm2284_vm9, 4294967295, %v2646_v49  ;;  %v2292_v50 = vld [vmem:[%s2610_s4] ss:$0 sm:$0xff] }
 0x127   : > { %2648 = vst [vmem:[#allocation13_spill] sm:$0xff] %v2647_v49 }
 0x128   : > { %1719 = vmatprep.mubr.bf16.mxu1 %v645_v54 }
 0x129   : > { %1720 = vmatmul.mubr.bf16.vlgmr.msra.gmra.mrb[0].mxu1 %v646_v52 }
 0x12a   : > { %v1677_v55 = vpop.f32.mrb[4].mxu0 }
 0x12b   : > { %v534_v56 = vpop.f32.mrb[5].mxu0 }
 0x12c   : > { %v1678_v57 = vpop.f32.mrb[6].mxu0 }
 0x12d   : > { %v648_v58 = vpack.c.bf16 %v1678_v57, %v1677_v55  ;;  %v537_v59 = vpop.f32.mrb[7].mxu0 }
 0x12e   : > { %v647_v60 = vpack.c.bf16 %v537_v59, %v534_v56 }
 0x130   : > { %1723 = vmatprep.mubr.bf16.mxu1 %v647_v60 }
 0x131   : > { %1724 = vmatmul.mubr.bf16.gmra.mrb[4].mxu1 %v648_v58 }
 0x132   : > { %v1681_v61 = vpop.f32.mrb[8].mxu0 }
 0x133   : > { %v550_v62 = vpop.f32.mrb[9].mxu0 }
 0x134   : > { %v1682_v63 = vpop.f32.mrb[10].mxu0 }
 0x135   : > { %v650_v2 = vpack.c.bf16 %v1682_v63, %v1681_v61  ;;  %v553_v3 = vpop.f32.mrb[11].mxu0 }
 0x136   : > { %v649_v4 = vpack.c.bf16 %v553_v3, %v550_v62 }
 0x138   : > { %1727 = vmatprep.mubr.bf16.mxu1 %v649_v4 }
 0x139   : > { %1728 = vmatmul.mubr.bf16.gmra.mrb[8].mxu1 %v650_v2 }
 0x13a   : > { %v1685_v6 = vpop.f32.mrb[12].mxu0 }
 0x13b   : > { %v566_v7 = vpop.f32.mrb[13].mxu0 }
 0x13c   : > { %v1686_v8 = vpop.f32.mrb[14].mxu0 }
 0x13d   : > { %v652_v9 = vpack.c.bf16 %v1686_v8, %v1685_v6  ;;  %v569_v10 = vpop.f32.mrb[15].mxu0 }
 0x13e   : > { %v651_v11 = vpack.c.bf16 %v569_v10, %v566_v7 }
 0x140   : > { %1731 = vmatprep.mubr.bf16.mxu1 %v651_v11 }
 0x141   : > { %1732 = vmatmul.mubr.bf16.gmra.mrb[12].mxu1 %v652_v9 }
 0x142   : > { %v1689_v13 = vpop.f32.mrb[16].mxu0 }
 0x143   : > { %v582_v14 = vpop.f32.mrb[17].mxu0 }
 0x144   : > { %v1690_v15 = vpop.f32.mrb[18].mxu0 }
 0x145   : > { %v654_v16 = vpack.c.bf16 %v1690_v15, %v1689_v13  ;;  %v585_v17 = vpop.f32.mrb[19].mxu0 }
 0x146   : > { %v653_v18 = vpack.c.bf16 %v585_v17, %v582_v14 }
 0x148   : > { %1735 = vmatprep.mubr.bf16.mxu1 %v653_v18 }
 0x149   : > { %1736 = vmatmul.mubr.bf16.gmra.mrb[16].mxu1 %v654_v16 }
 0x14a   : > { %v1693_v19 = vpop.f32.mrb[20].mxu0 }
 0x14b   : > { %v598_v20 = vpop.f32.mrb[21].mxu0 }
 0x14c   : > { %v1694_v21 = vpop.f32.mrb[22].mxu0 }
 0x14d   : > { %v656_v22 = vpack.c.bf16 %v1694_v21, %v1693_v19  ;;  %v601_v23 = vpop.f32.mrb[23].mxu0 }
 0x14e   : > { %v655_v24 = vpack.c.bf16 %v601_v23, %v598_v20 }
 0x150   : > { %1739 = vmatprep.mubr.bf16.mxu1 %v655_v24 }
 0x151   : > { %1740 = vmatmul.mubr.bf16.gmra.mrb[20].mxu1 %v656_v22 }
 0x152   : > { %v1697_v25 = vpop.f32.mrb[24].mxu0 }
 0x153   : > { %v614_v26 = vpop.f32.mrb[25].mxu0 }
 0x154   : > { %v1698_v27 = vpop.f32.mrb[26].mxu0 }
 0x155   : > { %v658_v28 = vpack.c.bf16 %v1698_v27, %v1697_v25  ;;  %v617_v29 = vpop.f32.mrb[27].mxu0 }
 0x156   : > { %v657_v30 = vpack.c.bf16 %v617_v29, %v614_v26 }
 0x158   : > { %1743 = vmatprep.mubr.bf16.mxu1 %v657_v30 }
 0x159   : > { %1744 = vmatmul.mubr.bf16.gmra.mrb[24].mxu1 %v658_v28 }
 0x15a   : > { %v1701_v31 = vpop.f32.mrb[28].mxu0 }
 0x15b   : > { %v630_v32 = vpop.f32.mrb[29].mxu0 }
 0x15c   : > { %v1702_v33 = vpop.f32.mrb[30].mxu0 }
 0x15d   : > { %v660_v34 = vpack.c.bf16 %v1702_v33, %v1701_v31  ;;  %v633_v35 = vpop.f32.mrb[31].mxu0 }
 0x15e   : > { %v659_v36 = vpack.c.bf16 %v633_v35, %v630_v32 }
 0x160   : > { %1747 = vmatprep.mubr.bf16.mxu1 %v659_v36 }
 0x161   : > { %1748 = vmatmul.mubr.bf16.gmra.mrb[28].mxu1 %v660_v34 }
 0x162   : > { %1568 = vmatprep.mubr.msk.bf16.mxu1 %vm1567_vm8, %v2615_v41 }
 0x1fc   : > { %v1721_v51 = vpop.f32.mrb[0].mxu1 }
 0x1fd   : > { %v775_v52 = vadd.f32 %v1721_v51, %v2292_v50  ;;  %v766_v53 = vpop.f32.mrb[1].mxu1 }
 0x1fe   : > { %v767_v54 = vadd.f32 %v2292_v50, %v766_v53  ;;  %v1722_v55 = vpop.f32.mrb[2].mxu1 }
 0x1ff   : > { %v927_v56 = vmul.f32 %v775_v52, %v775_v52  ;;  %v778_v57 = vadd.f32 %v1722_v55, %v2292_v50  ;;  %v769_v58 = vpop.f32.mrb[3].mxu1  ;;  %v2299_v14 = vmul.f32 0.5, %v775_v52 }
 0x200   : > { %v925_v59 = vmul.f32 %v767_v54, %v767_v54  ;;  %v770_v60 = vadd.f32 %v2292_v50, %v769_v58  ;;  %v2302_v20 = vmul.f32 0.5, %v767_v54 }
 0x201   : > { %v959_v61 = vmul.f32 %v927_v56, %v775_v52  ;;  %v928_v62 = vmul.f32 %v778_v57, %v778_v57  ;;  %v2304_v25 = vmul.f32 0.5, %v778_v57 }
 0x202   : > { %v957_v63 = vmul.f32 %v925_v59, %v767_v54  ;;  %v926_v2 = vmul.f32 %v770_v60, %v770_v60  ;;  %v2306_v29 = vmul.f32 0.5, %v770_v60 }
 0x203   : > { %v991_v3 = vmul.f32 0.044715, %v959_v61  ;;  %v960_v4 = vmul.f32 %v928_v62, %v778_v57 }
 0x204   : > { %v989_v6 = vmul.f32 0.044715, %v957_v63  ;;  %v958_v7 = vmul.f32 %v926_v2, %v770_v60  ;;  %v1725_v8 = vpop.f32.mrb[4].mxu1 }
 0x205   : > { %v1023_v9 = vadd.f32 %v991_v3, %v775_v52  ;;  %v992_v10 = vmul.f32 0.044715, %v960_v4  ;;  %v791_v11 = vadd.f32 %v1725_v8, %v2292_v50  ;;  %v782_v13 = vpop.f32.mrb[5].mxu1 }
 0x206   : > { %v1021_v15 = vadd.f32 %v989_v6, %v767_v54  ;;  %v990_v16 = vmul.f32 0.044715, %v958_v7  ;;  %v783_v17 = vadd.f32 %v2292_v50, %v782_v13  ;;  %v1726_v18 = vpop.f32.mrb[6].mxu1 }
 0x207   : > { %v1055_v19 = vmul.f32 0.7978846, %v1023_v9  ;;  %v1024_v21 = vadd.f32 %v992_v10, %v778_v57  ;;  %v931_v22 = vmul.f32 %v791_v11, %v791_v11  ;;  %v785_v23 = vpop.f32.mrb[7].mxu1  ;;  %v794_v31 = vadd.f32 %v1726_v18, %v2292_v50 }
 0x208   : > { %v1053_v24 = vmul.f32 0.7978846, %v1021_v15  ;;  %v1022_v26 = vadd.f32 %v990_v16, %v770_v60  ;;  %v929_v27 = vmul.f32 %v783_v17, %v783_v17  ;;  %v786_v34 = vadd.f32 %v2292_v50, %v785_v23 }
 0x209   : > { %v1056_v28 = vmul.f32 0.7978846, %v1024_v21  ;;  %v963_v30 = vmul.f32 %v931_v22, %v791_v11  ;;  %1834 = vtanh.f32 %v1055_v19  ;;  %v2310_v35 = vmul.f32 0.5, %v791_v11 }
 0x20a   : > { %v1054_v32 = vmul.f32 0.7978846, %v1022_v26  ;;  %v961_v33 = vmul.f32 %v929_v27, %v783_v17  ;;  %1836 = vtanh.f32 %v1053_v24  ;;  %v932_v37 = vmul.f32 %v794_v31, %v794_v31 }
 0x20b   : > { %v995_v36 = vmul.f32 0.044715, %v963_v30  ;;  %1838 = vtanh.f32 %v1056_v28  ;;  %v2312_v1 = vmul.f32 0.5, %v783_v17  ;;  %v930_v39 = vmul.f32 %v786_v34, %v786_v34 }
 0x20c   : > { %v993_v38 = vmul.f32 0.044715, %v961_v33  ;;  %v1729_v40 = vpop.f32.mrb[8].mxu1  ;;  %v2314_v42 = vmul.f32 0.5, %v794_v31  ;;  %v964_v43 = vmul.f32 %v932_v37, %v794_v31  ;;  %1840 = vtanh.f32 %v1054_v32 }
 0x20d   : > { %v1027_v5 = vadd.f32 %v995_v36, %v791_v11  ;;  %v807_v47 = vadd.f32 %v1729_v40, %v2292_v50  ;;  %v798_v48 = vpop.f32.mrb[9].mxu1  ;;  %v962_v52 = vmul.f32 %v930_v39, %v786_v34  ;;  %v2318_v57 = vmul.f32 0.5, %v786_v34 }
 0x20e   : > { %v1025_v51 = vadd.f32 %v993_v38, %v783_v17  ;;  %v799_v53 = vadd.f32 %v2292_v50, %v798_v48  ;;  %v1730_v54 = vpop.f32.mrb[10].mxu1  ;;  %v996_v56 = vmul.f32 0.044715, %v964_v43 }
 0x20f   : > { %v1059_v55 = vmul.f32 0.7978846, %v1027_v5  ;;  %v935_v58 = vmul.f32 %v807_v47, %v807_v47  ;;  %v801_v59 = vpop.f32.mrb[11].mxu1  ;;  %v994_v61 = vmul.f32 0.044715, %v962_v52  ;;  %v2320_v62 = vmul.f32 0.5, %v807_v47 }
 0x210   : > { %v1057_v60 = vmul.f32 0.7978846, %v1025_v51  ;;  %v933_v63 = vmul.f32 %v799_v53, %v799_v53  ;;  %v1028_v2 = vadd.f32 %v996_v56, %v794_v31  ;;  %v2322_v4 = vmul.f32 0.5, %v799_v53 }
 0x211   : > { %v967_v3 = vmul.f32 %v935_v58, %v807_v47  ;;  %v810_v6 = vadd.f32 %v1730_v54, %v2292_v50  ;;  %1842 = vtanh.f32 %v1059_v55  ;;  %v1026_v7 = vadd.f32 %v994_v61, %v786_v34 }
 0x212   : > { %v965_v8 = vmul.f32 %v933_v63, %v799_v53  ;;  %v802_v9 = vadd.f32 %v2292_v50, %v801_v59  ;;  %1844 = vtanh.f32 %v1057_v60  ;;  %v1060_v10 = vmul.f32 0.7978846, %v1028_v2 }
 0x213   : > { %v999_v11 = vmul.f32 0.044715, %v967_v3  ;;  %v936_v13 = vmul.f32 %v810_v6, %v810_v6  ;;  %v2326_v15 = vpop.eup %1834  ;;  %v1058_v16 = vmul.f32 0.7978846, %v1026_v7  ;;  %v2328_v18 = vmul.f32 0.5, %v810_v6 }
 0x214   : > { %v997_v17 = vmul.f32 0.044715, %v965_v8  ;;  %v934_v19 = vmul.f32 %v802_v9, %v802_v9  ;;  %v1733_v21 = vpop.f32.mrb[12].mxu1  ;;  %v2330_v22 = vpop.eup %1836  ;;  %v2332_v26 = vmul.f32 0.5, %v802_v9  ;;  %1846 = vtanh.f32 %v1060_v10 }
 0x215   : > { %v1031_v23 = vadd.f32 %v999_v11, %v807_v47  ;;  %v968_v24 = vmul.f32 %v936_v13, %v810_v6  ;;  %v823_v27 = vadd.f32 %v1733_v21, %v2292_v50  ;;  %v814_v28 = vpop.f32.mrb[13].mxu1  ;;  %v2335_v30 = vpop.eup %1838  ;;  %1848 = vtanh.f32 %v1058_v16 }
 0x216   : > { %v1029_v31 = vadd.f32 %v997_v17, %v799_v53  ;;  %v966_v32 = vmul.f32 %v934_v19, %v802_v9  ;;  %v815_v33 = vadd.f32 %v2292_v50, %v814_v28  ;;  %v1734_v34 = vpop.f32.mrb[14].mxu1  ;;  %v2338_v40 = vpop.eup %1840 }
 0x217   : > { %v1063_v36 = vmul.f32 0.7978846, %v1031_v23  ;;  %v1000_v37 = vmul.f32 0.044715, %v968_v24  ;;  %v939_v38 = vmul.f32 %v823_v27, %v823_v27  ;;  %v817_v39 = vpop.f32.mrb[15].mxu1  ;;  %v2340_v47 = vmul.f32 0.5, %v823_v27 }
 0x218   : > { %v1061_v5 = vmul.f32 0.7978846, %v1029_v31  ;;  %v998_v43 = vmul.f32 0.044715, %v966_v32  ;;  %v937_v48 = vmul.f32 %v815_v33, %v815_v33  ;;  %v2342_v54 = vmul.f32 0.5, %v815_v33 }
 0x219   : > { %2649 = vst [vmem:[#allocation14_spill] sm:$0xff] %v2340_v47  ;;  %v1032_v51 = vadd.f32 %v1000_v37, %v810_v6  ;;  %v971_v52 = vmul.f32 %v939_v38, %v823_v27  ;;  %v2345_v53 = vadd.f32 %v1734_v34, %v2292_v50  ;;  %1850 = vtanh.f32 %v1063_v36 }
 0x21a   : > { %2650 = vst [vmem:[#allocation15_spill] sm:$0xff] %v2342_v54  ;;  %v1030_v55 = vadd.f32 %v998_v43, %v802_v9  ;;  %v969_v56 = vmul.f32 %v937_v48, %v815_v33  ;;  %v818_v58 = vadd.f32 %v2292_v50, %v817_v39  ;;  %1852 = vtanh.f32 %v1061_v5 }
 0x21b   : > { %2651 = vst [vmem:[#allocation16_spill] sm:$0xff] %v2345_v53  ;;  %v1064_v59 = vmul.f32 0.7978846, %v1032_v51  ;;  %v1003_v60 = vmul.f32 0.044715, %v971_v52  ;;  %v940_v61 = vmul.f32 %v2345_v53, %v2345_v53  ;;  %v2350_v63 = vpop.eup %1842 }
 0x21c   : > { %v1062_v2 = vmul.f32 0.7978846, %v1030_v55  ;;  %v1001_v3 = vmul.f32 0.044715, %v969_v56  ;;  %v2352_v6 = vmul.f32 0.5, %v818_v58  ;;  %v938_v7 = vmul.f32 %v818_v58, %v818_v58  ;;  %v1737_v8 = vpop.f32.mrb[16].mxu1  ;;  %v2354_v10 = vpop.eup %1844 }
 0x21d   : > { %1854 = vtanh.f32 %v1064_v59  ;;  %v1035_v9 = vadd.f32 %v1003_v60, %v823_v27  ;;  %v972_v11 = vmul.f32 %v940_v61, %v2345_v53  ;;  %v2358_v13 = vadd.f32 %v1737_v8, %v2292_v50  ;;  %v830_v16 = vpop.f32.mrb[17].mxu1 }
 0x21e   : > { %2652 = vst [vmem:[#allocation17_spill] sm:$0xff] %v2352_v6  ;;  %1856 = vtanh.f32 %v1062_v2  ;;  %v1033_v17 = vadd.f32 %v1001_v3, %v815_v33  ;;  %v970_v19 = vmul.f32 %v938_v7, %v818_v58  ;;  %v831_v21 = vadd.f32 %v2292_v50, %v830_v16  ;;  %v1738_v23 = vpop.f32.mrb[18].mxu1  ;;  %v2366_v34 = vpop.eup %1846 }
 0x21f   : > { %v1067_v24 = vmul.f32 0.7978846, %v1035_v9  ;;  %v1004_v28 = vmul.f32 0.044715, %v972_v11  ;;  %v943_v31 = vmul.f32 %v2358_v13, %v2358_v13  ;;  %v2364_v32 = vadd.f32 %v1738_v23, %v2292_v50  ;;  %v833_v27 = vpop.f32.mrb[19].mxu1  ;;  %v2369_v39 = vpop.eup %1848 }
 0x220   : > { %v1065_v36 = vmul.f32 0.7978846, %v1033_v17  ;;  %v1002_v37 = vmul.f32 0.044715, %v970_v19  ;;  %v941_v38 = vmul.f32 %v831_v21, %v831_v21  ;;  %v834_v33 = vadd.f32 %v2292_v50, %v833_v27 }
 0x221   : > { %1858 = vtanh.f32 %v1067_v24  ;;  %v1036_v5 = vadd.f32 %v1004_v28, %v2345_v53  ;;  %v975_v43 = vmul.f32 %v943_v31, %v2358_v13  ;;  %v944_v48 = vmul.f32 %v2364_v32, %v2364_v32 }
 0x222   : > { %1860 = vtanh.f32 %v1065_v36  ;;  %v1034_v51 = vadd.f32 %v1002_v37, %v818_v58  ;;  %v973_v52 = vmul.f32 %v941_v38, %v831_v21  ;;  %v942_v55 = vmul.f32 %v834_v33, %v834_v33 }
 0x223   : > { %v1068_v56 = vmul.f32 0.7978846, %v1036_v5  ;;  %v1007_v59 = vmul.f32 0.044715, %v975_v43  ;;  %v976_v60 = vmul.f32 %v944_v48, %v2364_v32  ;;  %v2376_v61 = vmul.f32 0.5, %v831_v21  ;;  %v2378_v2 = vpop.eup %1850 }
 0x224   : > { %v1066_v3 = vmul.f32 0.7978846, %v1034_v51  ;;  %v1005_v7 = vmul.f32 0.044715, %v973_v52  ;;  %v974_v8 = vmul.f32 %v942_v55, %v834_v33  ;;  %v1741_v9 = vpop.f32.mrb[20].mxu1  ;;  %v2380_v11 = vmul.f32 0.5, %v834_v33  ;;  %v2382_v16 = vpop.eup %1852 }
 0x225   : > { %1862 = vtanh.f32 %v1068_v56  ;;  %v1039_v58 = vadd.f32 %v1007_v59, %v2358_v13  ;;  %v1008_v17 = vmul.f32 0.044715, %v976_v60  ;;  %v2386_v19 = vadd.f32 %v1741_v9, %v2292_v50  ;;  %v846_v23 = vpop.f32.mrb[21].mxu1 }
 0x226   : > { %1864 = vtanh.f32 %v1066_v3  ;;  %v1037_v24 = vadd.f32 %v1005_v7, %v831_v21  ;;  %v1006_v28 = vmul.f32 0.044715, %v974_v8  ;;  %v2389_v31 = vadd.f32 %v2292_v50, %v846_v23  ;;  %v1742_v27 = vpop.f32.mrb[22].mxu1 }
 0x227   : > { %v2391_v36 = vpop.eup %1854  ;;  %v1071_v37 = vmul.f32 0.7978846, %v1039_v58  ;;  %v1040_v38 = vadd.f32 %v1008_v17, %v2364_v32  ;;  %v947_v5 = vmul.f32 %v2386_v19, %v2386_v19  ;;  %v2397_v43 = vadd.f32 %v1742_v27, %v2292_v50  ;;  %v849_v48 = vpop.f32.mrb[23].mxu1 }
 0x228   : > { %v2399_v51 = vpop.eup %1856  ;;  %v1069_v21 = vmul.f32 0.7978846, %v1037_v24  ;;  %v1038_v52 = vadd.f32 %v1006_v28, %v834_v33  ;;  %v945_v55 = vmul.f32 %v2389_v31, %v2389_v31  ;;  %v2404_v56 = vadd.f32 %v2292_v50, %v849_v48 }
 0x229   : > { %1866 = vtanh.f32 %v1071_v37  ;;  %v1072_v59 = vmul.f32 0.7978846, %v1040_v38  ;;  %v979_v60 = vmul.f32 %v947_v5, %v2386_v19  ;;  %v948_v3 = vmul.f32 %v2397_v43, %v2397_v43 }
 0x22a   : > { %1868 = vtanh.f32 %v1069_v21  ;;  %v1070_v7 = vmul.f32 0.7978846, %v1038_v52  ;;  %v977_v8 = vmul.f32 %v945_v55, %v2389_v31  ;;  %v946_v33 = vmul.f32 %v2404_v56, %v2404_v56 }
 0x22b   : > { %v2412_v9 = vpop.eup %1858  ;;  %1870 = vtanh.f32 %v1072_v59  ;;  %v1011_v58 = vmul.f32 0.044715, %v979_v60  ;;  %v980_v17 = vmul.f32 %v948_v3, %v2397_v43  ;;  %v1117_v23 = vadd.f32 1.0, %v2330_v22 }
 0x22c   : > { %2653 = vst [vmem:[#allocation18_spill] sm:$0xff] %v2412_v9  ;;  %v2416_v24 = vpop.eup %1860  ;;  %1872 = vtanh.f32 %v1070_v7  ;;  %v1009_v28 = vmul.f32 0.044715, %v977_v8  ;;  %v978_v27 = vmul.f32 %v946_v33, %v2404_v56  ;;  %v1745_v37 = vpop.f32.mrb[24].mxu1  ;;  %v1118_v38 = vadd.f32 1.0, %v2338_v40 }
 0x22d   : > { %v1043_v5 = vadd.f32 %v1011_v58, %v2386_v19  ;;  %v1012_v48 = vmul.f32 0.044715, %v980_v17  ;;  %v2422_v21 = vadd.f32 %v1745_v37, %v2292_v50  ;;  %v862_v52 = vpop.f32.mrb[25].mxu1  ;;  %v1149_v55 = vmul.f32 %v1117_v23, %v2302_v20 }
 0x22e   : > { %v1041_v22 = vadd.f32 %v1009_v28, %v2389_v31  ;;  %v1010_v59 = vmul.f32 0.044715, %v978_v27  ;;  %v2427_v60 = vadd.f32 %v2292_v50, %v862_v52  ;;  %v1746_v3 = vpop.f32.mrb[26].mxu1  ;;  %v1150_v7 = vmul.f32 %v1118_v38, %v2306_v29 }
 0x22f   : > { %v2430_v8 = vpop.eup %1862  ;;  %v1075_v40 = vmul.f32 0.7978846, %v1043_v5  ;;  %v1044_v33 = vadd.f32 %v1012_v48, %v2397_v43  ;;  %v951_v58 = vmul.f32 %v2422_v21, %v2422_v21  ;;  %v2436_v17 = vadd.f32 %v1746_v3, %v2292_v50  ;;  %v865_v20 = vpop.f32.mrb[27].mxu1 }
 0x230   : > { %2654 = vst [vmem:[#allocation19_spill] sm:$0xff] %v2430_v8  ;;  %v2438_v23 = vpop.eup %1864  ;;  %v1073_v28 = vmul.f32 0.7978846, %v1041_v22  ;;  %v1042_v27 = vadd.f32 %v1010_v59, %v2404_v56  ;;  %v949_v29 = vmul.f32 %v2427_v60, %v2427_v60  ;;  %v2444_v37 = vadd.f32 %v2292_v50, %v865_v20 }
 0x231   : > { %1874 = vtanh.f32 %v1075_v40  ;;  %v1076_v38 = vmul.f32 0.7978846, %v1044_v33  ;;  %v983_v5 = vmul.f32 %v951_v58, %v2422_v21  ;;  %v952_v48 = vmul.f32 %v2436_v17, %v2436_v17 }
 0x232   : > { %1876 = vtanh.f32 %v1073_v28  ;;  %v1074_v52 = vmul.f32 0.7978846, %v1042_v27  ;;  %v981_v3 = vmul.f32 %v949_v29, %v2427_v60  ;;  %v950_v22 = vmul.f32 %v2444_v37, %v2444_v37 }
 0x233   : > { %v1867_v59 = vpop.eup %1866  ;;  %1878 = vtanh.f32 %v1076_v38  ;;  %v1015_v41 = vmul.f32 0.044715, %v983_v5  ;;  %v984_v20 = vmul.f32 %v952_v48, %v2436_v17  ;;  %v2453_v46 = vpack.c.bf16 %v1150_v7, %v1149_v55 }
 0x234   : > { %v1869_v40 = vpop.eup %1868  ;;  %1880 = vtanh.f32 %v1074_v52  ;;  %v1013_v33 = vmul.f32 0.044715, %v981_v3  ;;  %v982_v58 = vmul.f32 %v950_v22, %v2444_v37  ;;  %v1749_v45 = vpop.f32.mrb[28].mxu1  ;;  %v911_v28 = vmul.f32 0.5, %v2358_v13 }
 0x235   : > { %v1871_v27 = vpop.eup %1870  ;;  %v1047_v29 = vadd.f32 %v1015_v41, %v2422_v21  ;;  %v1016_v44 = vmul.f32 0.044715, %v984_v20  ;;  %v2459_v0 = vadd.f32 %v1749_v45, %v2292_v50  ;;  %v878_v38 = vpop.f32.mrb[29].mxu1  ;;  %v1133_v5 = vadd.f32 1.0, %v1869_v40 }
 0x236   : > { %v1873_v48 = vpop.eup %1872  ;;  %v1045_v55 = vadd.f32 %v1013_v33, %v2427_v60  ;;  %v1014_v7 = vmul.f32 0.044715, %v982_v58  ;;  %v2463_v52 = vadd.f32 %v2292_v50, %v878_v38  ;;  %v1750_v3 = vpop.f32.mrb[30].mxu1  ;;  %v912_v22 = vmul.f32 0.5, %v2364_v32 }
 0x237   : > { %v1079_v13 = vmul.f32 0.7978846, %v1047_v29  ;;  %v1048_v49 = vadd.f32 %v1016_v44, %v2436_v17  ;;  %v955_v41 = vmul.f32 %v2459_v0, %v2459_v0  ;;  %v2470_v45 = vadd.f32 %v1750_v3, %v2292_v50  ;;  %v881_v20 = vpop.f32.mrb[31].mxu1 }
 0x238   : > { %v1077_v40 = vmul.f32 0.7978846, %v1045_v55  ;;  %v1046_v33 = vadd.f32 %v1014_v7, %v2444_v37  ;;  %v953_v58 = vmul.f32 %v2463_v52, %v2463_v52  ;;  %v2476_v38 = vadd.f32 %v2292_v50, %v881_v20 }
 0x239   : > { %1882 = vtanh.f32 %v1079_v13  ;;  %v1080_v32 = vmul.f32 0.7978846, %v1048_v49  ;;  %v987_v44 = vmul.f32 %v955_v41, %v2459_v0  ;;  %v956_v29 = vmul.f32 %v2470_v45, %v2470_v45 }
 0x23a   : > { %1884 = vtanh.f32 %v1077_v40  ;;  %v1078_v3 = vmul.f32 0.7978846, %v1046_v33  ;;  %v985_v12 = vmul.f32 %v953_v58, %v2463_v52  ;;  %v954_v55 = vmul.f32 %v2476_v38, %v2476_v38 }
 0x23b   : > { %v1875_v7 = vpop.eup %1874  ;;  %1886 = vtanh.f32 %v1080_v32  ;;  %v1019_v47 = vmul.f32 0.044715, %v987_v44  ;;  %v988_v50 = vmul.f32 %v956_v29, %v2470_v45  ;;  %v1134_v20 = vadd.f32 1.0, %v1873_v48 }
 0x23c   : > { %v1877_v13 = vpop.eup %1876  ;;  %1888 = vtanh.f32 %v1078_v3  ;;  %v1017_v49 = vmul.f32 0.044715, %v985_v12  ;;  %v986_v41 = vmul.f32 %v954_v55, %v2476_v38  ;;  %v1165_v8 = vmul.f32 %v1133_v5, %v2376_v61 }
 0x23d   : > { %v1879_v40 = vpop.eup %1878  ;;  %v1051_v33 = vadd.f32 %v1019_v47, %v2459_v0  ;;  %v1020_v58 = vmul.f32 0.044715, %v988_v50  ;;  %v1166_v9 = vmul.f32 %v1134_v20, %v2380_v11  ;;  %v1135_v53 = vadd.f32 1.0, %v1867_v59 }
 0x23e   : > { %v1881_v6 = vpop.eup %1880  ;;  %v1049_v32 = vadd.f32 %v1017_v49, %v2463_v52  ;;  %v1018_v44 = vmul.f32 0.044715, %v986_v41  ;;  %v1136_v29 = vadd.f32 1.0, %v1871_v27  ;;  %v1119_v48 = vadd.f32 1.0, %v2326_v15 }
 0x23f   : > { %v1083_v3 = vmul.f32 0.7978846, %v1051_v33  ;;  %v1052_v12 = vadd.f32 %v1020_v58, %v2470_v45  ;;  %v1280_v55 = vpack.c.bf16 %v1166_v9, %v1165_v8  ;;  %v1167_v54 = vmul.f32 %v1135_v53, %v911_v28 }
 0x240   : > { %v1081_v61 = vmul.f32 0.7978846, %v1049_v32  ;;  %v1050_v5 = vadd.f32 %v1018_v44, %v2476_v38  ;;  %v1168_v47 = vmul.f32 %v1136_v29, %v912_v22  ;;  %v1120_v50 = vadd.f32 1.0, %v2335_v30 }
 0x241   : > { %1890 = vtanh.f32 %v1083_v3  ;;  %v1084_v11 = vmul.f32 0.7978846, %v1052_v12  ;;  %1623 = vmatprep.subr.bf16.mxu0 %v1280_v55  ;;  %1751 = vmatprep.subr.bf16.mxu1 %v1280_v55  ;;  %v1151_v59 = vmul.f32 %v1119_v48, %v2299_v14  ;;  %v913_v27 = vmul.f32 0.5, %v2389_v31 }
 0x242   : > { %1892 = vtanh.f32 %v1081_v61  ;;  %v1082_v15 = vmul.f32 0.7978846, %v1050_v5  ;;  %1624 = vmatpush3.bf16.msra.mxu0 %v2453_v46  ;;  %1759 = vmatpush3.bf16.msra.mxu1 %v2453_v46  ;;  %v1281_v53 = vpack.c.bf16 %v1168_v47, %v1167_v54  ;;  %v1152_v9 = vmul.f32 %v1120_v50, %v2304_v25 }
 0x243   : > { %v1883_v8 = vpop.eup %1882  ;;  %1894 = vtanh.f32 %v1084_v11  ;;  %v914_v30 = vmul.f32 0.5, %v2404_v56  ;;  %v1137_v28 = vadd.f32 1.0, %v1877_v13  ;;  %v1138_v22 = vadd.f32 1.0, %v1881_v6 }
 0x244   : > { %v1885_v20 = vpop.eup %1884  ;;  %1896 = vtanh.f32 %v1082_v15  ;;  %1625 = vmatprep.subr.bf16.mxu0 %v1281_v53  ;;  %1752 = vmatprep.subr.bf16.mxu1 %v1281_v53  ;;  %v1273_v14 = vpack.c.bf16 %v1152_v9, %v1151_v59  ;;  %v1121_v31 = vadd.f32 1.0, %v2354_v10  ;;  %v1122_v49 = vadd.f32 1.0, %v2369_v39 }
 0x245   : > { %v1887_v41 = vpop.eup %1886  ;;  %v1169_v46 = vmul.f32 %v1137_v28, %v913_v27  ;;  %v1170_v54 = vmul.f32 %v1138_v22, %v914_v30  ;;  %v915_v25 = vmul.f32 0.5, %v2386_v19  ;;  %v916_v33 = vmul.f32 0.5, %v2397_v43 }
 0x246   : > { %v1889_v58 = vpop.eup %1888  ;;  %1626 = vmatpush3.bf16.msra.mxu0 %v1273_v14  ;;  %1760 = vmatpush3.bf16.msra.mxu1 %v1273_v14  ;;  %v1153_v6 = vmul.f32 %v1121_v31, %v2312_v1  ;;  %v1154_v56 = vmul.f32 %v1122_v49, %v2318_v57  ;;  %v1139_v13 = vadd.f32 1.0, %v1875_v7  ;;  %v1140_v32 = vadd.f32 1.0, %v1879_v40 }
 0x247   : > { %v1282_v44 = vpack.c.bf16 %v1170_v54, %v1169_v46  ;;  %v1123_v10 = vadd.f32 1.0, %v2350_v63  ;;  %v1124_v39 = vadd.f32 1.0, %v2366_v34  ;;  %v917_v29 = vmul.f32 0.5, %v2427_v60  ;;  %v2656_v46 = vld [vmem:[#allocation17_spill] sm:$0xff] }
 0x248   : > { %v1274_v48 = vpack.c.bf16 %v1154_v56, %v1153_v6  ;;  %v1171_v19 = vmul.f32 %v1139_v13, %v915_v25  ;;  %v1172_v3 = vmul.f32 %v1140_v32, %v916_v33  ;;  %v918_v43 = vmul.f32 0.5, %v2444_v37  ;;  %v2657_v33 = vld [vmem:[#allocation16_spill] sm:$0xff]  ;;  %v2659_v6 = vld [vmem:[#allocation19_spill] sm:$0xff] }
 0x249   : > { %1627 = vmatprep.subr.bf16.mxu0 %v1282_v44  ;;  %1753 = vmatprep.subr.bf16.mxu1 %v1282_v44  ;;  %v1155_v1 = vmul.f32 %v1123_v10, %v2310_v35  ;;  %v1156_v57 = vmul.f32 %v1124_v39, %v2314_v42  ;;  %v1141_v7 = vadd.f32 1.0, %v1885_v20  ;;  %v1142_v40 = vadd.f32 1.0, %v1889_v58  ;;  %v2660_v44 = vld [vmem:[#allocation14_spill] sm:$0xff] }
 0x24a   : > { %1628 = vmatpush3.bf16.msra.mxu0 %v1274_v48  ;;  %1761 = vmatpush3.bf16.msra.mxu1 %v1274_v48  ;;  %v1283_v63 = vpack.c.bf16 %v1172_v3, %v1171_v19  ;;  %v1125_v34 = vadd.f32 1.0, %v2382_v16  ;;  %v1126_v60 = vadd.f32 1.0, %v2399_v51  ;;  %v919_v12 = vmul.f32 0.5, %v2422_v21 }
 0x24b   : > { %v1891_v55 = vpop.eup %1890  ;;  %v1275_v61 = vpack.c.bf16 %v1156_v57, %v1155_v1  ;;  %v1173_v37 = vmul.f32 %v1141_v7, %v917_v29  ;;  %v1174_v5 = vmul.f32 %v1142_v40, %v918_v43  ;;  %v920_v47 = vmul.f32 0.5, %v2436_v17 }
 0x24c   : > { %v1893_v35 = vpop.eup %1892  ;;  %1629 = vmatprep.subr.bf16.mxu0 %v1283_v63  ;;  %1754 = vmatprep.subr.bf16.mxu1 %v1283_v63  ;;  %v1157_v42 = vmul.f32 %v1125_v34, %v2322_v4  ;;  %v1158_v50 = vmul.f32 %v1126_v60, %v2332_v26  ;;  %v1143_v11 = vadd.f32 1.0, %v1883_v8  ;;  %v1144_v59 = vadd.f32 1.0, %v1887_v41  ;;  %v2655_v41 = vld [vmem:[#allocation15_spill] sm:$0xff] }
 0x24d   : > { %v1895_v16 = vpop.eup %1894  ;;  %v1284_v27 = vpack.c.bf16 %v1174_v5, %v1173_v37  ;;  %v1127_v51 = vadd.f32 1.0, %v2378_v2  ;;  %v1128_v21 = vadd.f32 1.0, %v2391_v36  ;;  %v921_v15 = vmul.f32 0.5, %v2463_v52 }
 0x24e   : > { %v1897_v53 = vpop.eup %1896  ;;  %1630 = vmatpush3.bf16.msra.mxu0 %v1275_v61  ;;  %1762 = vmatpush3.bf16.msra.mxu1 %v1275_v61  ;;  %v1276_v17 = vpack.c.bf16 %v1158_v50, %v1157_v42  ;;  %v1175_v9 = vmul.f32 %v1143_v11, %v919_v12  ;;  %v1176_v30 = vmul.f32 %v1144_v59, %v920_v47  ;;  %v922_v4 = vmul.f32 0.5, %v2476_v38 }
 0x24f   : > { %1631 = vmatprep.subr.bf16.mxu0 %v1284_v27  ;;  %1755 = vmatprep.subr.bf16.mxu1 %v1284_v27  ;;  %v1159_v26 = vmul.f32 %v1127_v51, %v2320_v62  ;;  %v1160_v8 = vmul.f32 %v1128_v21, %v2328_v18  ;;  %v1145_v28 = vadd.f32 1.0, %v1893_v35  ;;  %v1146_v2 = vadd.f32 1.0, %v1897_v53 }
 0x250   : > { %v1285_v22 = vpack.c.bf16 %v1176_v30, %v1175_v9  ;;  %v1129_v36 = vadd.f32 1.0, %v2416_v24  ;;  %v1130_v52 = vadd.f32 1.0, %v2438_v23  ;;  %v923_v20 = vmul.f32 0.5, %v2459_v0  ;;  %v2658_v23 = vld [vmem:[#allocation18_spill] sm:$0xff] }
 0x251   : > { %v1277_v14 = vpack.c.bf16 %v1160_v8, %v1159_v26  ;;  %v1177_v31 = vmul.f32 %v1145_v28, %v921_v15  ;;  %v1178_v49 = vmul.f32 %v1146_v2, %v922_v4  ;;  %v924_v38 = vmul.f32 0.5, %v2470_v45 }
 0x252   : > { %1632 = vmatpush3.bf16.msra.mxu0 %v1276_v17  ;;  %1763 = vmatpush3.bf16.msra.mxu1 %v1276_v17  ;;  %v1161_v62 = vmul.f32 %v1129_v36, %v2655_v41  ;;  %v1162_v18 = vmul.f32 %v1130_v52, %v2656_v46  ;;  %v1147_v54 = vadd.f32 1.0, %v1891_v55  ;;  %v1148_v25 = vadd.f32 1.0, %v1895_v16 }
 0x253   : > { %v908_v58 = vmul.f32 0.5, %v2657_v33  ;;  %1633 = vmatprep.subr.bf16.mxu0 %v1285_v22  ;;  %1756 = vmatprep.subr.bf16.mxu1 %v1285_v22  ;;  %v1286_v24 = vpack.c.bf16 %v1178_v49, %v1177_v31  ;;  %v1131_v0 = vadd.f32 1.0, %v2658_v23  ;;  %v1132_v56 = vadd.f32 1.0, %v2659_v6 }
 0x254   : > { %v1278_v13 = vpack.c.bf16 %v1162_v18, %v1161_v62  ;;  %v1179_v32 = vmul.f32 %v1147_v54, %v923_v20  ;;  %v1180_v45 = vmul.f32 %v1148_v25, %v924_v38  ;;  %v2661_v19 = vmov 1.0|1.0  }
 0x255   : > { %v1163_v10 = vmul.f32 %v1131_v0, %v2660_v44  ;;  %v1164_v39 = vmul.f32 %v1132_v56, %v908_v58 }
 0x256   : > { %1634 = vmatpush3.bf16.msra.mxu0 %v1277_v14  ;;  %1764 = vmatpush3.bf16.msra.mxu1 %v1277_v14  ;;  %v1287_v29 = vpack.c.bf16 %v1180_v45, %v1179_v32 }
 0x257   : > { %1635 = vmatprep.subr.bf16.mxu0 %v1286_v24  ;;  %1757 = vmatprep.subr.bf16.mxu1 %v1286_v24  ;;  %v1279_v48 = vpack.c.bf16 %v1164_v39, %v1163_v10 }
 0x25a   : > { %1636 = vmatpush3.bf16.msra.mxu0 %v1278_v13  ;;  %1765 = vmatpush3.bf16.msra.mxu1 %v1278_v13 }
 0x25b   : > { %1637 = vmatprep.subr.bf16.mxu0 %v1287_v29  ;;  %1758 = vmatprep.subr.bf16.mxu1 %v1287_v29 }
 0x25e   : > { %1638 = vmatpush3.bf16.msra.mxu0 %v1279_v48  ;;  %1766 = vmatpush3.bf16.msra.mxu1 %v1279_v48 }
 0x261   : > { %1558 = vmatmul.mubr.msk.bf16.vlgmr.msra.gmra.mrb[32].mxu0 %vm2262_vm11, %v2661_v19  ;;  %1570 = vmatmul.mubr.msk.bf16.vlgmr.msra.gmra.mrb[32].mxu1 %vm2284_vm9, %v2661_v19 }
 0x262   : > { %1560 = vmatprep.mubr.msk.bf16.mxu0 %vm2267_vm12, %v2661_v19 }
 0x269   : > { %1562 = vmatmul.mubr.msk.bf16.gmra.mrb[36].mxu0 %vm2272_vm13, %v2661_v19 }
 0x26a   : > { %1564 = vmatprep.mubr.msk.bf16.mxu0 %vm2276_vm2, %v2661_v19 }
 0x271   : > { %1566 = vmatmul.mubr.msk.bf16.gmra.mrb[40].mxu0 %vm2280_vm4, %v2661_v19 }
 0x334   : > { %v1639_v63 = vpop.f32.mrb[32].mxu0  ;;  %v1657_v34 = vpop.f32.mrb[32].mxu1 }
 0x335   : > { %v1640_v60 = vpop.f32.mrb[33].mxu0  ;;  %v1658_v12 = vpop.f32.mrb[33].mxu1 }
 0x336   : > { %v1641_v55 = vadd.f32 %v1640_v60, %v1639_v63  ;;  %v1642_v61 = vpop.f32.mrb[34].mxu0  ;;  %v1659_v37 = vadd.f32 %v1658_v12, %v1657_v34  ;;  %v1660_v5 = vpop.f32.mrb[34].mxu1 }
 0x337   : > { %v1643_v47 = vpop.f32.mrb[35].mxu0  ;;  %v1661_v35 = vpop.f32.mrb[35].mxu1 }
 0x338   : > { %1353 = vst [vmem:[%s258_s26] sm:$0xff] %v1641_v55  ;;  %v1644_v42 = vadd.f32 %v1643_v47, %v1642_v61  ;;  %1359 = vst [vmem:[%s258_s26 + $0x30] sm:$0xff] %v1659_v37  ;;  %v1662_v50 = vadd.f32 %v1661_v35, %v1660_v5 }
 0x33a   : > { %1354 = vst [vmem:[%s258_s26 + $0x8] sm:$0xff] %v1644_v42  ;;  %1360 = vst [vmem:[%s258_s26 + $0x38] sm:$0xff] %v1662_v50 }
 0x33c   : > { %v1645_v11 = vpop.f32.mrb[36].mxu0 }
 0x33d   : > { %v1646_v59 = vpop.f32.mrb[37].mxu0 }
 0x33e   : > { %v1647_v16 = vadd.f32 %v1646_v59, %v1645_v11  ;;  %v1648_v27 = vpop.f32.mrb[38].mxu0 }
 0x33f   : > { %v1649_v51 = vpop.f32.mrb[39].mxu0 }
 0x340   : > { %1355 = vst [vmem:[%s258_s26 + $0x10] sm:$0xff] %v1647_v16  ;;  %v1650_v21 = vadd.f32 %v1649_v51, %v1648_v27 }
 0x342   : > { %1356 = vst [vmem:[%s258_s26 + $0x18] sm:$0xff] %v1650_v21 }
 0x344   : > { %v1651_v15 = vpop.f32.mrb[40].mxu0 }
 0x345   : > { %v1652_v53 = vpop.f32.mrb[41].mxu0 }
 0x346   : > { %v1653_v17 = vadd.f32 %v1652_v53, %v1651_v15  ;;  %v1654_v9 = vpop.f32.mrb[42].mxu0 }
 0x347   : > { %v1655_v30 = vpop.f32.mrb[43].mxu0 }
 0x348   : > { %1357 = vst [vmem:[%s258_s26 + $0x20] sm:$0xff] %v1653_v17  ;;  %v1656_v4 = vadd.f32 %v1655_v30, %v1654_v9 }
 0x34a   : > { %1358 = vst [vmem:[%s258_s26 + $0x28] sm:$0xff] %v1656_v4 }
 0x34b   : > { %1939 = shalt.err (!%p1936_p7)
}
 0x34c   : > { %s1940_s14 = scalar_lea.hbm %s2561_s9, 1024  ;;  %s1944_s17 = scalar_lea.hbm %s2611_s5, 2048 }
 0x34d   : > { %p1941_p8 = scmp.ne.s32.totalorder %s2561_s9, %s1940_s14  ;;  %p1945_p1 = scmp.lt.u32.totalorder %s2561_s9, %s2611_s5 }
 0x34e   : > { %p1946_p0 = scmp.lt.u32.totalorder %s1944_s17, %s1940_s14  ;;  %p1948_p6 = scmp.lt.u32.totalorder %s1940_s14, %s2561_s9 }
 0x34f   : > { %p1942_p11 = pnand %p1941_p8, %p2668_p9 }
 0x350   : > { %p1947_p5 = por %p1946_p0, %p1945_p1 }
 0x351   : > { %p1943_p13 = pneg %p1942_p11 }
 0x352   : > { %p1949_p10 = por %p1948_p6, %p1947_p5 }
 0x354   : > { %p1950_p12 = pnand %p1949_p10, %p1943_p13 }
 0x356   : > { %1953 = shalt.err (!%p1950_p12)
}
 0x357   : > { %s2001_s26 = smov 128   ;;  %s2002_s30 = smov 8  }
 0x358   : > { %1771 = dma.vmem_to_hbm [thread:$0]  (%p2668_p9), %s2556_s6, 1024, %s2561_s9, %s2565_s10, %s2001_s26, %s2001_s26, %s2002_s30  }
 0x359 PF: > { %p1783_p2 = scmp.ge.s32.totalorder %s1992_s21, 2  ;;  %s1390_s7 = sand.u32 1, %s1980_s18  }
 0x35a   : > { %p2669_p3 = scmp.ne.s32.totalorder %s2625_s29, 0  ;;  %s1391_s8 = scalar_lea.sflag [#allocation4], %s1390_s7 }
 0x35c   : > { %p1778_p4 = pnand %p1783_p2, %p2669_p3 }
 0x35e   : > { %1975 = dma.done.wait (!%p1778_p4), %s1391_s8, 1024  }
 0x35f   : > { %1977 = vsyncadd (!%p1778_p4), %s1391_s8, 4294966272  ;;  %p16_p7 = scmp.ge.s32.totalorder %s2058_s24, 4   ;;  %s2670_s18 = smov %s1984_s19 }
 0x360   : > { %s2671_s19 = smov %s1988_s20  ;;  %s2672_s20 = smov %s2069_s27 }
 0x361   : > { %s2673_s21 = smov %s2058_s24  ;;  %18 = sbr.rel (!%p16_p7) target bundleno = 4 (0x4), region = 86 }
 0x368   :  { %1396 = vsyncpa [#allocation3], 1 }
 0x369   :  { %1398 = vsyncpa [#allocation3 + $0x1], 1 }
 0x36a   :  { %1399 = vsyncpa [#allocation4], 1 }
 0x36b   :  { %1401 = vsyncpa [#allocation4 + $0x1], 1 }

</bundles_post_ra>
